<compile_context>
chip_gen: v6e
topology: v6e:2x2x1
jax: 0.10.0
libtpu: 0.0.40
codegen_flags: <defaults>
</compile_context>

<pallas_src>
import jax
import jax.numpy as jnp
from jax.experimental import pallas as pl
from jax.experimental.pallas import tpu as pltpu

_LANES = 128          # lane width
_TR_MAX = 4096        # sublane rows per block -> 2 MiB f32 per input block


def _sqdiff_kernel(x_ref, r_ref, out_ref, acc_ref):
    j = pl.program_id(1)

    @pl.when(j == 0)
    def _():
        acc_ref[...] = jnp.zeros_like(acc_ref)

    d = x_ref[...].astype(jnp.float32) - r_ref[...].astype(jnp.float32)
    acc_ref[...] += d * d                      # pure VPU, hidden under the DMAs

    @pl.when(j == pl.num_programs(1) - 1)
    def _():
        tr = acc_ref.shape[0]
        # Fold (tr,128) -> (8,128): sublane-tile-respecting reshape + vreg adds
        # (no lane/sublane shuffles), done once per part.
        out_ref[...] = jnp.sum(acc_ref[...].reshape(tr // 8, 8, _LANES), axis=0)


def _partial_sq_diff(xs, rs, tr, parts, steps):
    in_spec = pl.BlockSpec((tr, _LANES), lambda p, j: (p * steps + j, 0))
    out_spec = pl.BlockSpec((8, _LANES), lambda p, j: (p, 0))
    return pl.pallas_call(
        _sqdiff_kernel,
        out_shape=jax.ShapeDtypeStruct((parts * 8, _LANES), jnp.float32),
        grid_spec=pltpu.PrefetchScalarGridSpec(
            num_scalar_prefetch=0,
            grid=(parts, steps),
            in_specs=[in_spec, in_spec],
            out_specs=out_spec,
            scratch_shapes=[pltpu.VMEM((tr, _LANES), jnp.float32)],
        ),
        compiler_params=pltpu.CompilerParams(
            dimension_semantics=("parallel", "arbitrary"),
            vmem_limit_bytes=32 * 1024 * 1024,
        ),
    )(xs, rs)


def fft_loss(x, recon):
    """x, recon: (N, C, H, W) float arrays. Returns scalar float32 loss."""
    N, C, H, W = x.shape
    total = N * C * H * W

    # Pick sublane multiple matching the dtype's packing; exotic dtypes fall
    # back to an f32 cast in the wrapper.
    itemsize = jnp.dtype(x.dtype).itemsize
    if itemsize == 4:
        sub = 8
    elif itemsize == 2:
        sub = 16
    else:
        x = x.astype(jnp.float32)
        recon = recon.astype(jnp.float32)
        sub = 8

    # lane-dense layout: (rows, 128), rows a multiple of the sublane packing
    rows = -(-total // _LANES)
    rows = ((rows + sub - 1) // sub) * sub
    tr = min(_TR_MAX, rows)
    parts = 2 if rows >= 2 * tr else 1            # 2 partials -> v7x megacore
    rows_padded = ((rows + parts * tr - 1) // (parts * tr)) * (parts * tr)
    steps = rows_padded // (parts * tr)

    def _prep(a):
        a = a.reshape(-1)
        pad = rows_padded * _LANES - total
        if pad:
            a = jnp.pad(a, (0, pad))              # identical zero pad for both
        return a.reshape(rows_padded, _LANES)     # free view when pad == 0

    partial = _partial_sq_diff(_prep(x), _prep(recon), tr, parts, steps)

    # Parseval: MSE over FFT real/imag components == sum((x - recon)^2) / (N*C)
    return (jnp.sum(partial) / jnp.float32(N * C)).astype(jnp.float32)


def _reference(x, recon):
    # Pure-JAX reference of the PyTorch forward (actual FFTs) for verification.
    zx = x.astype(jnp.complex64) * (1.0 + 1.0j)
    zr = recon.astype(jnp.complex64) * (1.0 + 1.0j)
    dx = jnp.fft.fft2(zx, axes=(2, 3)) - jnp.fft.fft2(zr, axes=(2, 3))
    return (jnp.sum(jnp.real(dx) ** 2 + jnp.imag(dx) ** 2)
            / (dx.size * 2)).astype(jnp.float32)


if __name__ == "__main__":
    key = jax.random.PRNGKey(0)
    k1, k2 = jax.random.split(key)
    N, C, H, W = 2, 4, 16, 16
    x = jax.random.normal(k1, (N, C, H, W), dtype=jnp.float32)
    recon = jax.random.normal(k2, (N, C, H, W), dtype=jnp.float32)

    loss = jax.block_until_ready(fft_loss(x, recon))

    ref = _reference(x, recon)
    assert jnp.allclose(loss, ref, rtol=1e-3, atol=1e-3), (loss, ref)
    print("KERNEL_OK")
</pallas_src>

<mosaic_0001>
module attributes {stable_mosaic.version = 11 : i64} {
  func.func @_sqdiff_kernel(%arg0: i32, %arg1: i32, %arg2: memref<16x128xf32, #tpu.memory_space<vmem>>, %arg3: memref<16x128xf32, #tpu.memory_space<vmem>>, %arg4: memref<8x128xf32, #tpu.memory_space<vmem>>, %arg5: memref<16x128xf32, #tpu.memory_space<vmem>>) attributes {dimension_semantics = [#tpu.dimension_semantics<parallel>, #tpu.dimension_semantics<arbitrary>], iteration_bounds = array<i64: 1, 1>, scalar_prefetch = 0 : i64, scratch_operands = 1 : i64, tpu.core_type = #tpu.core_type<tc>, window_params = [{transform_indices = @transform_0, window_bounds = array<i64: 16, 128>}, {transform_indices = @transform_1, window_bounds = array<i64: 16, 128>}, {transform_indices = @transform_2, window_bounds = array<i64: 8, 128>}]} {
    %c0_i32 = arith.constant 0 : i32
    %0 = arith.cmpi eq, %arg1, %c0_i32 : i32
    %1 = arith.extui %0 : i1 to i32
    %c0_i32_0 = arith.constant 0 : i32
    %2 = arith.cmpi ne, %1, %c0_i32_0 : i32
    scf.if %2 {
      %cst = arith.constant 0.000000e+00 : f32
      %13 = vector.broadcast %cst : f32 to vector<16x128xf32>
      %c0_10 = arith.constant 0 : index
      %c0_11 = arith.constant 0 : index
      %14 = vector.load %arg5[%c0_10, %c0_11] : memref<16x128xf32, #tpu.memory_space<vmem>>, vector<16x128xf32>
      tpu.vector_store %arg5[%c0_10, %c0_11], %13 {strides = array<i32>} : memref<16x128xf32, #tpu.memory_space<vmem>>, vector<16x128xf32>,
    } else {
    }
    %c0 = arith.constant 0 : index
    %c0_1 = arith.constant 0 : index
    %3 = vector.load %arg2[%c0, %c0_1] : memref<16x128xf32, #tpu.memory_space<vmem>>, vector<16x128xf32>
    %c0_2 = arith.constant 0 : index
    %c0_3 = arith.constant 0 : index
    %4 = vector.load %arg3[%c0_2, %c0_3] : memref<16x128xf32, #tpu.memory_space<vmem>>, vector<16x128xf32>
    %5 = arith.subf %3, %4 : vector<16x128xf32>
    %c0_4 = arith.constant 0 : index
    %c0_5 = arith.constant 0 : index
    %6 = vector.load %arg5[%c0_4, %c0_5] : memref<16x128xf32, #tpu.memory_space<vmem>>, vector<16x128xf32>
    %7 = arith.mulf %5, %5 : vector<16x128xf32>
    %8 = arith.addf %6, %7 : vector<16x128xf32>
    %c0_6 = arith.constant 0 : index
    %c0_7 = arith.constant 0 : index
    %9 = vector.load %arg5[%c0_6, %c0_7] : memref<16x128xf32, #tpu.memory_space<vmem>>, vector<16x128xf32>
    tpu.vector_store %arg5[%c0_6, %c0_7], %8 {strides = array<i32>} : memref<16x128xf32, #tpu.memory_space<vmem>>, vector<16x128xf32>,
    %c0_i32_8 = arith.constant 0 : i32
    %10 = arith.cmpi eq, %arg1, %c0_i32_8 : i32
    %11 = arith.extui %10 : i1 to i32
    %c0_i32_9 = arith.constant 0 : i32
    %12 = arith.cmpi ne, %11, %c0_i32_9 : i32
    scf.if %12 {
      %c0_10 = arith.constant 0 : index
      %c0_11 = arith.constant 0 : index
      %13 = vector.load %arg5[%c0_10, %c0_11] : memref<16x128xf32, #tpu.memory_space<vmem>>, vector<16x128xf32>
      %14 = vector.shape_cast %13 : vector<16x128xf32> to vector<2x8x128xf32>
      %cst = arith.constant dense<0.000000e+00> : vector<8x128xf32>
      %15 = vector.multi_reduction <add>, %14, %cst [0] : vector<2x8x128xf32> to vector<8x128xf32>
      %c0_12 = arith.constant 0 : index
      %c0_13 = arith.constant 0 : index
      %16 = vector.load %arg4[%c0_12, %c0_13] : memref<8x128xf32, #tpu.memory_space<vmem>>, vector<8x128xf32>
      tpu.vector_store %arg4[%c0_12, %c0_13], %15 {strides = array<i32>} : memref<8x128xf32, #tpu.memory_space<vmem>>, vector<8x128xf32>,
    } else {
    }
    return
  }
  func.func @transform_0(%arg0: i32, %arg1: i32) -> (i32, i32) {
    %c1_i32 = arith.constant 1 : i32
    %0 = arith.muli %arg0, %c1_i32 : i32
    %1 = arith.addi %0, %arg1 : i32
    %c0_i32 = arith.constant 0 : i32
    %c0_i32_0 = arith.constant 0 : i32
    return %1, %c0_i32 : i32, i32
  }
  func.func @transform_1(%arg0: i32, %arg1: i32) -> (i32, i32) {
    %c1_i32 = arith.constant 1 : i32
    %0 = arith.muli %arg0, %c1_i32 : i32
    %1 = arith.addi %0, %arg1 : i32
    %c0_i32 = arith.constant 0 : i32
    %c0_i32_0 = arith.constant 0 : i32
    return %1, %c0_i32 : i32, i32
  }
  func.func @transform_2(%arg0: i32, %arg1: i32) -> (i32, i32) {
    %c0_i32 = arith.constant 0 : i32
    %c0_i32_0 = arith.constant 0 : i32
    return %arg0, %c0_i32 : i32, i32
  }
}

</mosaic_0001>

<bundles_post_ra>
// kernel: tpu_custom_call.1
= control target key start
LH: loop header
LB: loop body
LE: loop exit
PB: predicated region body
PF: predicated region fallthrough
CT: control target
= control target key end

     0   :  { %7 = vsyncpa [#allocation4], 0  ;;  %s195_s0 = inlined_call_operand.hbm [shape: f32[16,128], index: 0, kind: input, shape index: {}]   ;;  %s196_s1 = inlined_call_operand.hbm [shape: f32[16,128], index: 1, kind: input, shape index: {}]   ;;  %s197_s2 = inlined_call_operand.hbm [shape: f32[8,128], index: 2, kind: output, shape index: {}]  }
   0x1   :  { %8 = vsyncpa [#allocation7], 0 }
   0x2   :  { %9 = vsyncpa [#allocation5], 0  ;;  %s166_s9 = smov [#allocation3]  }
   0x3   :  { %s19_s10 = sshll.u32 %s166_s9, 4  ;;  %s20_s10 = int_to_ptr.vmem [resolvable:$true] %s19_s10 }
   0x4   :  { %s108_s11 = scalar_lea.vmem %s20_s10, 256  ;;  %p113_p1 = scmp.lt.s32.totalorder %s20_s10, %s20_s10 }
   0x5   :  { %p109_p0 = scmp.ne.s32.totalorder %s20_s10, %s108_s11  ;;  %p114_p2 = scmp.lt.s32.totalorder %s108_s11, %s108_s11 }
   0x7   :  { %p115_p3 = por %p114_p2, %p113_p1 }
   0x9   :  { %p116_p4 = pnand %p115_p3, %p109_p0 }
   0xb   :  { %119 = shalt.err (!%p116_p4)
}
   0xc   :  { %s167_s12 = smov 128   ;;  %s168_s13 = smov 8  }
   0xd   :  { %25 = dma.hbm_to_vmem [thread:$0]  %s195_s0, 256, %s20_s10, [#allocation4], %s167_s12, %s167_s12, %s168_s13  }
   0xe   :  { %s169_s16 = smov [#allocation6]  }
   0xf   :  { %s35_s17 = sshll.u32 %s169_s16, 4  ;;  %s36_s17 = int_to_ptr.vmem [resolvable:$true] %s35_s17 }
  0x10   :  { %s128_s18 = scalar_lea.vmem %s36_s17, 256  ;;  %p133_p6 = scmp.lt.s32.totalorder %s36_s17, %s36_s17 }
  0x11   :  { %p129_p5 = scmp.ne.s32.totalorder %s36_s17, %s128_s18  ;;  %p134_p7 = scmp.lt.s32.totalorder %s128_s18, %s128_s18 }
  0x13   :  { %p135_p8 = por %p134_p7, %p133_p6 }
  0x15   :  { %p136_p9 = pnand %p135_p8, %p129_p5 }
  0x17   :  { %139 = shalt.err (!%p136_p9)
}
  0x18   :  { %41 = dma.hbm_to_vmem [thread:$0]  %s196_s1, 256, %s36_s17, [#allocation7], %s167_s12, %s167_s12, %s168_s13  }
  0x19   :  { %160 = dma.done.wait [#allocation4], 256  }
  0x1a   :  { %161 = vsyncadd [#allocation4], 4294967040 }
  0x1b   :  { %162 = dma.done.wait [#allocation7], 256  }
  0x1c   :  { %163 = vsyncadd [#allocation7], 4294967040  ;;  %v58_v0 = vld [vmem:[#allocation3] sm:$0xff]  ;;  %v59_v1 = vld [vmem:[#allocation3 + $0x8] sm:$0xff]  ;;  %s170_s0 = smov [#allocation8]  }
  0x1d   :  { %v60_v2 = vld [vmem:[#allocation6] sm:$0xff]  ;;  %v61_v3 = vld [vmem:[#allocation6 + $0x8] sm:$0xff]  ;;  %s85_s21 = sshll.u32 %s170_s0, 4  ;;  %s86_s21 = int_to_ptr.vmem [resolvable:$true] %s85_s21 }
  0x1e   :  { %v62_v4 = vsub.f32 %v58_v0, %v60_v2  ;;  %v63_v5 = vsub.f32 %v59_v1, %v61_v3  ;;  %s140_s22 = scalar_lea.vmem %s86_s21, 128  ;;  %p145_p11 = scmp.lt.s32.totalorder %s86_s21, %s86_s21 }
  0x1f   :  { %p141_p10 = scmp.ne.s32.totalorder %s86_s21, %s140_s22  ;;  %p146_p12 = scmp.lt.s32.totalorder %s140_s22, %s140_s22 }
  0x20   :  { %v66_v6 = vmul.f32 %v62_v4, %v62_v4  ;;  %v67_v7 = vmul.f32 %v63_v5, %v63_v5 }
  0x21   :  { %p147_p13 = por %p146_p12, %p145_p11 }
  0x22   :  { %v77_v8 = vadd.f32 %v67_v7, %v66_v6 }
  0x23   :  { %p148_p0 = pnand %p147_p13, %p141_p10 }
  0x24   :  { %78 = vst [vmem:[#allocation8] sm:$0xff] %v77_v8 }
  0x25   :  { %151 = shalt.err (!%p148_p0)
}
  0x26   :  { %88 = dma.vmem_to_hbm [thread:$0]  %s86_s21, 128, %s197_s2, [#allocation5]  }
  0x27   :  { %164 = dma.done.wait [#allocation5], 128  }
  0x28   :  { %165 = vsyncadd [#allocation5], 4294967168 }
  0x29   :  { %92 = vsyncpa [#allocation4], 1 }
  0x2a   :  { %93 = vsyncpa [#allocation7], 1 }
  0x2b   :  { %94 = vsyncpa [#allocation5], 1 }

</bundles_post_ra>
